<compile_context>
chip_gen: v7x
topology: tpu7x:2x2x1
jax: 0.10.0
libtpu: 0.0.40
codegen_flags: <defaults>
</compile_context>

<pallas_src>
import jax
import jax.numpy as jnp
from jax.experimental import pallas as pl
from jax.experimental.pallas import tpu as pltpu


def _round_up(v: int, m: int) -> int:
    return ((v + m - 1) // m) * m


def _build_interp_matrix(t_in: int, length: int) -> jnp.ndarray:
    """Dense (T, L) f32 matrix W s.t. y = x @ W == F.interpolate(x, size=L,
    mode='linear', align_corners=True) along the last axis."""
    if length == 1:
        # align_corners=True with a single output sample maps to input coord 0.
        return jnp.zeros((t_in, 1), jnp.float32).at[0, 0].set(1.0)
    j = jnp.arange(length, dtype=jnp.float32)
    pos = j * (t_in - 1) / (length - 1)                  # source coord, align_corners=True
    i0 = jnp.clip(jnp.floor(pos).astype(jnp.int32), 0, t_in - 1)
    i1 = jnp.clip(i0 + 1, 0, t_in - 1)
    frac = pos - i0.astype(jnp.float32)
    rows = jnp.arange(t_in, dtype=jnp.int32)[:, None]    # (T, 1)
    w0 = jnp.where(rows == i0[None, :], 1.0 - frac[None, :], 0.0)
    w1 = jnp.where(rows == i1[None, :], frac[None, :], 0.0)
    return w0 + w1                                       # f32


def _interp_matmul_kernel(x_ref, w_ref, o_ref, acc_ref):
    """Per grid step: accumulate (tm, tk) @ (tk, Lp) into an f32 VMEM accumulator.
    Grid = (M tiles, K tiles); K is the last ("arbitrary") axis."""
    k = pl.program_id(1)

    @pl.when(k == 0)
    def _():
        acc_ref[...] = jnp.zeros_like(acc_ref)

    acc_ref[...] += jnp.dot(
        x_ref[...], w_ref[...], preferred_element_type=jnp.float32
    )

    @pl.when(k == pl.num_programs(1) - 1)
    def _():
        o_ref[...] = acc_ref[...].astype(o_ref.dtype)


def ts_interpolate(x: jnp.ndarray, length: int) -> jnp.ndarray:
    """x: (B, F, T) -> (B, F, length); linear interpolation, align_corners=True."""
    b, f, t = x.shape
    m = b * f
    dtype = x.dtype
    itemsize = jnp.dtype(dtype).itemsize
    x2d = x.reshape(m, t)

    # ---- Lane-dense output: pad L up to a multiple of 128. ----
    lp = _round_up(length, 128)

    # ---- Contraction (T) tiling. Small T: single K tile == full (padded) T. ----
    if t <= 1024:
        tk = _round_up(t, 8)
        tp = tk
    else:
        tk = 512                       # multiple of both 8 and 128
        tp = _round_up(t, tk)
    nk = tp // tk

    # ---- M tiling with a conservative VMEM budget (f32 sizing, double-buffered
    #      x / W / out tiles + f32 accumulator). Target < ~40 MiB so it fits
    #      comfortably inside v7x's 64 MiB physical VMEM. ----
    def _budget(tm_):
        return 4 * (2 * tm_ * tk + 2 * tk * lp + 2 * tm_ * lp + tm_ * lp)

    tm = min(512, _round_up(m, 8))
    while tm > 8 and _budget(tm) > 40 * 1024 * 1024:
        tm = max(8, (tm // 2 // 8) * 8)
    mp = _round_up(m, tm)

    # ---- Pad inputs with zeros (padded T rows / L cols of W are zero, so they
    #      contribute nothing; padded M rows are sliced away afterwards). ----
    x_p = jnp.zeros((mp, tp), dtype=dtype).at[:m, :t].set(x2d)
    w_f32 = _build_interp_matrix(t, length)
    w_p = jnp.zeros((tp, lp), jnp.float32).at[:t, :length].set(w_f32)
    # Downcast W only at the MXU feed (f32 accumulation in-kernel). For f32 inputs
    # this is a no-op; for bf16 inputs it halves W's HBM/VMEM traffic.
    w_p = w_p.astype(dtype)

    grid = (mp // tm, nk)
    cost = pl.CostEstimate(
        flops=2 * mp * tp * lp,
        transcendentals=0,
        bytes_accessed=(mp * tp + tp * lp + mp * lp) * itemsize,
    )

    out_p = pl.pallas_call(
        _interp_matmul_kernel,
        out_shape=jax.ShapeDtypeStruct((mp, lp), dtype),
        grid=grid,
        in_specs=[
            pl.BlockSpec((tm, tk), lambda i, k: (i, k)),   # x tile
            pl.BlockSpec((tk, lp), lambda i, k: (k, 0)),   # W tile (VMEM-resident when nk==1)
        ],
        out_specs=pl.BlockSpec((tm, lp), lambda i, k: (i, 0)),
        scratch_shapes=[pltpu.VMEM((tm, lp), jnp.float32)],
        compiler_params=pltpu.CompilerParams(
            dimension_semantics=("parallel", "arbitrary"),
            vmem_limit_bytes=64 * 1024 * 1024,
        ),
        cost_estimate=cost,
    )(x_p, w_p)

    return out_p[:m, :length].reshape(b, f, length)


def _reference(x: jnp.ndarray, length: int) -> jnp.ndarray:
    """Pure-JAX gather-based reference for F.interpolate(mode='linear', align_corners=True)."""
    b, f, t = x.shape
    if length == 1:
        return x[..., :1]
    j = jnp.arange(length, dtype=jnp.float32)
    pos = j * (t - 1) / (length - 1)
    i0 = jnp.clip(jnp.floor(pos).astype(jnp.int32), 0, t - 1)
    i1 = jnp.clip(i0 + 1, 0, t - 1)
    frac = (pos - i0.astype(jnp.float32)).astype(x.dtype)
    x0 = x[..., i0]
    x1 = x[..., i1]
    return x0 * (1.0 - frac) + x1 * frac


if __name__ == "__main__":
    key = jax.random.PRNGKey(0)
    B, F, T = 2, 4, 16
    LENGTH = 32  # target interpolation length (module __init__ arg)
    x = jax.random.normal(key, (B, F, T), dtype=jnp.float32)

    out = jax.block_until_ready(ts_interpolate(x, LENGTH))

    ref = _reference(x, LENGTH)
    assert out.shape == (B, F, LENGTH), out.shape
    assert jnp.allclose(out, ref, atol=1e-5, rtol=1e-5), float(jnp.max(jnp.abs(out - ref)))

    print("KERNEL_OK")
</pallas_src>

<mosaic_0001>
module attributes {stable_mosaic.version = 11 : i64} {
  func.func @_interp_matmul_kernel(%arg0: i32, %arg1: i32, %arg2: memref<8x16xf32, #tpu.memory_space<vmem>>, %arg3: memref<16x128xf32, #tpu.memory_space<vmem>>, %arg4: memref<8x128xf32, #tpu.memory_space<vmem>>, %arg5: memref<8x128xf32, #tpu.memory_space<vmem>>) attributes {dimension_semantics = [#tpu.dimension_semantics<parallel>, #tpu.dimension_semantics<arbitrary>], iteration_bounds = array<i64: 1, 1>, scalar_prefetch = 0 : i64, scratch_operands = 1 : i64, tpu.core_type = #tpu.core_type<tc>, window_params = [{transform_indices = @transform_0, window_bounds = array<i64: 8, 16>}, {transform_indices = @transform_1, window_bounds = array<i64: 16, 128>}, {transform_indices = @transform_2, window_bounds = array<i64: 8, 128>}]} {
    %c0_i32 = arith.constant 0 : i32
    %0 = arith.cmpi eq, %arg1, %c0_i32 : i32
    %1 = arith.extui %0 : i1 to i32
    %c0_i32_0 = arith.constant 0 : i32
    %2 = arith.cmpi ne, %1, %c0_i32_0 : i32
    scf.if %2 {
      %cst_10 = arith.constant 0.000000e+00 : f32
      %12 = vector.broadcast %cst_10 : f32 to vector<8x128xf32>
      %c0_11 = arith.constant 0 : index
      %c0_12 = arith.constant 0 : index
      %13 = vector.load %arg5[%c0_11, %c0_12] : memref<8x128xf32, #tpu.memory_space<vmem>>, vector<8x128xf32>
      tpu.vector_store %arg5[%c0_11, %c0_12], %12 {strides = array<i32>} : memref<8x128xf32, #tpu.memory_space<vmem>>, vector<8x128xf32>,
    } else {
    }
    %c0 = arith.constant 0 : index
    %c0_1 = arith.constant 0 : index
    %3 = vector.load %arg5[%c0, %c0_1] : memref<8x128xf32, #tpu.memory_space<vmem>>, vector<8x128xf32>
    %c0_2 = arith.constant 0 : index
    %c0_3 = arith.constant 0 : index
    %4 = vector.load %arg2[%c0_2, %c0_3] : memref<8x16xf32, #tpu.memory_space<vmem>>, vector<8x16xf32>
    %c0_4 = arith.constant 0 : index
    %c0_5 = arith.constant 0 : index
    %5 = vector.load %arg3[%c0_4, %c0_5] : memref<16x128xf32, #tpu.memory_space<vmem>>, vector<16x128xf32>
    %cst = arith.constant dense<0.000000e+00> : vector<8x128xf32>
    %6 = tpu.matmul %4, %5, %cst {dimension_numbers = #tpu.dot_dimension_numbers<[1], [0], [0], [1], [0, 0, 1, 1], [], []>} : vector<8x16xf32>, vector<16x128xf32>, vector<8x128xf32> -> vector<8x128xf32>
    %7 = arith.addf %3, %6 : vector<8x128xf32>
    %c0_6 = arith.constant 0 : index
    %c0_7 = arith.constant 0 : index
    %8 = vector.load %arg5[%c0_6, %c0_7] : memref<8x128xf32, #tpu.memory_space<vmem>>, vector<8x128xf32>
    tpu.vector_store %arg5[%c0_6, %c0_7], %7 {strides = array<i32>} : memref<8x128xf32, #tpu.memory_space<vmem>>, vector<8x128xf32>,
    %c0_i32_8 = arith.constant 0 : i32
    %9 = arith.cmpi eq, %arg1, %c0_i32_8 : i32
    %10 = arith.extui %9 : i1 to i32
    %c0_i32_9 = arith.constant 0 : i32
    %11 = arith.cmpi ne, %10, %c0_i32_9 : i32
    scf.if %11 {
      %c0_10 = arith.constant 0 : index
      %c0_11 = arith.constant 0 : index
      %12 = vector.load %arg5[%c0_10, %c0_11] : memref<8x128xf32, #tpu.memory_space<vmem>>, vector<8x128xf32>
      %c0_12 = arith.constant 0 : index
      %c0_13 = arith.constant 0 : index
      %13 = vector.load %arg4[%c0_12, %c0_13] : memref<8x128xf32, #tpu.memory_space<vmem>>, vector<8x128xf32>
      tpu.vector_store %arg4[%c0_12, %c0_13], %12 {strides = array<i32>} : memref<8x128xf32, #tpu.memory_space<vmem>>, vector<8x128xf32>,
    } else {
    }
    return
  }
  func.func @transform_0(%arg0: i32, %arg1: i32) -> (i32, i32) {
    %c0_i32 = arith.constant 0 : i32
    return %arg0, %arg1 : i32, i32
  }
  func.func @transform_1(%arg0: i32, %arg1: i32) -> (i32, i32) {
    %c0_i32 = arith.constant 0 : i32
    %c0_i32_0 = arith.constant 0 : i32
    return %arg1, %c0_i32 : i32, i32
  }
  func.func @transform_2(%arg0: i32, %arg1: i32) -> (i32, i32) {
    %c0_i32 = arith.constant 0 : i32
    %c0_i32_0 = arith.constant 0 : i32
    return %arg0, %c0_i32 : i32, i32
  }
}

</mosaic_0001>

<bundles_post_ra>
// kernel: tpu_custom_call.1
= control target key start
LH: loop header
LB: loop body
LE: loop exit
PB: predicated region body
PF: predicated region fallthrough
CT: control target
= control target key end

     0   :  { %7 = vsyncpa [#allocation4], 0  ;;  %s304_s0 = inlined_call_operand.hbm [shape: f32[8,16], index: 0, kind: input, shape index: {}]   ;;  %s305_s1 = inlined_call_operand.hbm [shape: f32[16,128], index: 1, kind: input, shape index: {}]   ;;  %s306_s2 = inlined_call_operand.hbm [shape: f32[8,128], index: 2, kind: output, shape index: {}]  }
   0x1   :  { %8 = vsyncpa [#allocation7], 0 }
   0x2   :  { %9 = vsyncpa [#allocation5], 0  ;;  %s238_s9 = smov [#allocation3]   ;;  %s239_s11 = smov [#allocation6]  }
   0x3   :  { %s16_s10 = sshll.u32 %s238_s9, 4  ;;  %s25_s12 = sshll.u32 %s239_s11, 4  ;;  %s17_s10 = int_to_ptr.vmem [resolvable:$true] %s16_s10  ;;  %s261_s12 = int_to_ptr.vmem [resolvable:$true] %s25_s12 }
   0x4   :  { %s166_s15 = scalar_lea.hbm %s304_s0, 128 }
   0x5   :  { %p167_p0 = scmp.ne.s32.totalorder %s304_s0, %s166_s15  ;;  %p170_p1 = scmp.lt.u32.totalorder %s166_s15, %s304_s0 }
   0x7   :  { %p172_p2 = pnand %p170_p1, %p167_p0 }
   0x9   :  { %175 = shalt.err (!%p172_p2)
}
   0xa   :  { %s176_s20 = scalar_lea.vmem %s17_s10, 128  ;;  %p181_p4 = scmp.lt.s32.totalorder %s17_s10, %s17_s10 }
   0xb   :  { %p177_p3 = scmp.ne.s32.totalorder %s17_s10, %s176_s20  ;;  %p182_p5 = scmp.lt.s32.totalorder %s176_s20, %s176_s20 }
   0xd   :  { %p183_p6 = por %p182_p5, %p181_p4 }
   0xf   :  { %p184_p7 = pnand %p183_p6, %p177_p3 }
  0x11   :  { %187 = shalt.err (!%p184_p7)
}
  0x12   :  { %19 = dma.hbm_to_vmem [thread:$0]  %s304_s0, 128, %s17_s10, [#allocation4]  }
  0x13   :  { %s188_s25 = scalar_lea.hbm %s305_s1, 256 }
  0x14   :  { %p189_p8 = scmp.ne.s32.totalorder %s305_s1, %s188_s25  ;;  %p192_p9 = scmp.lt.u32.totalorder %s188_s25, %s305_s1 }
  0x16   :  { %p194_p10 = pnand %p192_p9, %p189_p8 }
  0x18   :  { %197 = shalt.err (!%p194_p10)
}
  0x19   :  { %s198_s30 = scalar_lea.vmem %s261_s12, 256  ;;  %p203_p12 = scmp.lt.s32.totalorder %s261_s12, %s261_s12 }
  0x1a   :  { %p199_p11 = scmp.ne.s32.totalorder %s261_s12, %s198_s30  ;;  %p204_p13 = scmp.lt.s32.totalorder %s198_s30, %s198_s30 }
  0x1c   :  { %p205_p0 = por %p204_p13, %p203_p12 }
  0x1e   :  { %p206_p1 = pnand %p205_p0, %p199_p11 }
  0x20   :  { %209 = shalt.err (!%p206_p1)
}
  0x21   :  { %s240_s0 = smov 128   ;;  %s241_s3 = smov 8  }
  0x22   :  { %31 = dma.hbm_to_vmem [thread:$0]  %s305_s1, 256, %s261_s12, [#allocation7], %s240_s0, %s240_s0, %s241_s3  }
  0x23   :  { %232 = dma.done.wait [#allocation4], 128  }
  0x24   :  { %233 = vsyncadd [#allocation4], 4294967168 }
  0x25   :  { %234 = dma.done.wait [#allocation7], 256  }
  0x26   :  { %235 = vsyncadd [#allocation7], 4294967040  ;;  %v242_v0 = vmov 0.0|0.0   ;;  %vm243_vm0 = vmmov 0   ;;  %v244_v1 = vmov 0.0   ;;  %v45_v2 = vld [vmem:[#allocation6] sm:$0xff] }
  0x27   :  { %155 = vmatprep.subr.bf16.mxu0 %v242_v0  ;;  %152 = vmatprep.mubr.msk.f32.mxu0 %vm243_vm0, %v244_v1  ;;  %v46_v3 = vld [vmem:[#allocation6 + $0x8] sm:$0xff]  ;;  %v44_v5 = vld [vmem:[#allocation3] sm:$0xff]  ;;  %vm47_vm1 = vcmask 130048   ;;  %s245_s6 = smov [#allocation8]  }
  0x28   :  { %v156_v4 = vpack.c.bf16 %v46_v3, %v45_v2  ;;  %s134_s7 = sshll.u32 %s245_s6, 4  ;;  %s135_s7 = int_to_ptr.vmem [resolvable:$true] %s134_s7 }
  0x29   :  { %s210_s1 = scalar_lea.vmem %s135_s7, 128  ;;  %p215_p3 = scmp.lt.s32.totalorder %s135_s7, %s135_s7 }
  0x2a   :  { %157 = vmatpush3.bf16.msra.mxu0 %v156_v4  ;;  %p211_p2 = scmp.ne.s32.totalorder %s135_s7, %s210_s1  ;;  %p216_p4 = scmp.lt.s32.totalorder %s210_s1, %s210_s1 }
  0x2c   :  { %p217_p5 = por %p216_p4, %p215_p3 }
  0x2d   :  { %153 = vmatmul.mubr.msk.f32.vlgmr.msra.gmra.mrb[0].mxu0 %vm47_vm1, %v44_v5 }
  0x2e   :  { %p218_p6 = pnand %p217_p5, %p211_p2 }
 0x100   :  { %v117_v6 = vpop.f32.mrb[0].mxu0 }
 0x101   :  { %127 = vst [vmem:[#allocation8] sm:$0xff] %v117_v6  ;;  %v154_v7 = vpop.f32.mrb[1].mxu0 }
 0x102   :  { %221 = shalt.err (!%p218_p6)
}
 0x103   :  { %s222_s10 = scalar_lea.hbm %s306_s2, 128 }
 0x104   :  { %p223_p7 = scmp.ne.s32.totalorder %s306_s2, %s222_s10  ;;  %p226_p8 = scmp.lt.u32.totalorder %s222_s10, %s306_s2 }
 0x106   :  { %p228_p9 = pnand %p226_p8, %p223_p7 }
 0x108   :  { %231 = shalt.err (!%p228_p9)
}
 0x109   :  { %137 = dma.vmem_to_hbm [thread:$0]  %s135_s7, 128, %s306_s2, [#allocation5]  }
 0x10a   :  { %236 = dma.done.wait [#allocation5], 128  }
 0x10b   :  { %237 = vsyncadd [#allocation5], 4294967168 }
 0x10c   :  { %141 = vsyncpa [#allocation4], 1 }
 0x10d   :  { %142 = vsyncpa [#allocation7], 1 }
 0x10e   :  { %143 = vsyncpa [#allocation5], 1 }

</bundles_post_ra>
